<compile_context>
chip_gen: v7x
topology: tpu7x:2x2x1
jax: 0.10.0
libtpu: 0.0.40
codegen_flags: <defaults>
</compile_context>

<pallas_src>
import jax
import jax.numpy as jnp
from jax.experimental import pallas as pl
from jax.experimental.pallas import tpu as pltpu


# ---------------------------------------------------------------------------
# Generation detection & VMEM budgets
# ---------------------------------------------------------------------------

def _tpu_generation():
    try:
        kind = jax.devices()[0].device_kind.lower()
    except Exception:
        return "unknown"
    if "v7" in kind:
        return "v7x"
    if "v6" in kind:
        return "v6e"
    if "v5" in kind:
        return "v5e"
    return "unknown"


def _vmem_budget(gen):
    """(compiler vmem_limit cap, in-kernel working-set budget) in bytes."""
    if gen in ("v5e", "v6e"):
        # 128 MiB physical VMEM; use most of it.
        return 100 * 1024 * 1024, 96 * 1024 * 1024
    # v7x: 64 MiB physical per TensorCore -> leave headroom for compiler
    # internal scratch / pipeline buffers.  Unknown gens get the safe budget.
    return 48 * 1024 * 1024, 40 * 1024 * 1024


# ---------------------------------------------------------------------------
# Kernel
# ---------------------------------------------------------------------------

def _linear_kernel(x_ref, w_ref, b_ref, o_ref):
    """One (tm, Cp) output tile: full-K bf16 MXU matmul (f32 acc) + f32 bias."""
    o_ref[...] = (
        jnp.dot(x_ref[...], w_ref[...], preferred_element_type=jnp.float32)
        + b_ref[...]
    ).astype(o_ref.dtype)


# ---------------------------------------------------------------------------
# Tiling
# ---------------------------------------------------------------------------

def _tile_vmem_bytes(tm, K, Cp, x_isz, w_isz, out_isz, b_isz):
    return (
        2 * tm * K * x_isz      # x row tile (double buffered by the pipeline)
        + 2 * K * Cp * w_isz    # resident W^T: one DMA, but 2 pipeline buffers
        + 2 * tm * Cp * out_isz # output tile (double buffered)
        + 2 * Cp * b_isz        # resident bias
    )


_TM_CANDIDATES = (8192, 4096, 2048, 1024, 512, 256, 128, 64, 32, 16, 8)


def _pick_tm(M, gen, fits):
    """Pick the batch (row) tile.

    v7x (2 TensorCores): prefer the largest 8-aligned divisor of M giving an
    even block count >= 2 so the parallel axis shards evenly across both TCs.
    v5e / v6e (1 TensorCore): the grid is a sequential loop, so the largest
    block that fits VMEM is strictly best (often the whole batch, grid=(1,)).
    """
    if gen == "v7x":
        for cand in _TM_CANDIDATES:
            nblk = M // cand if M % cand == 0 else 0
            if nblk >= 2 and nblk % 2 == 0 and fits(cand):
                return cand
    # Single-TC chips (and v7x fallback): biggest block that fits.
    if fits(M):
        return M
    for cand in _TM_CANDIDATES:
        if M % cand == 0 and fits(cand):
            return cand
    return M  # full-extent block (always a legal block shape)


# ---------------------------------------------------------------------------
# Parameter prep + forward wrapper
# ---------------------------------------------------------------------------

def prepare_params(weight, bias, gen=None):
    """One-time parameter prep.

    weight: [num_classes, in_size] (PyTorch nn.Linear convention)
    bias:   [num_classes]
    Returns (w_t_bf16 [in_size, Cp], bias_f32 [1, Cp], num_classes) where Cp is
    num_classes zero-padded to a lane-dense width (128, or 256 on v6e/v7x).
    """
    if gen is None:
        gen = _tpu_generation()
    C, K = weight.shape

    lane = 128
    Cp = ((C + lane - 1) // lane) * lane
    if gen in ("v6e", "v7x") and Cp < 256:
        Cp = 256  # fill the 256-wide MXU N dimension

    w_t = weight.T.astype(jnp.bfloat16)          # [K, C], bf16 halves HBM bytes
    b = bias.astype(jnp.float32)                 # bias add stays f32 (v5e VPU)
    if Cp != C:
        w_t = jnp.pad(w_t, ((0, 0), (0, Cp - C)))
        b = jnp.pad(b, (0, Cp - C))
    return w_t, b.reshape(1, Cp), C


def logreg_forward(x, w_t, b2, num_classes=None, *, tm=None, out_dtype=jnp.float32):
    """Pallas implementation of LogReg.forward (a single nn.Linear).

    x:   [batch, in_size]                    (any float dtype; cast to bf16)
    w_t: [in_size, Cp]  bf16                 (from prepare_params)
    b2:  [1, Cp]        f32                  (from prepare_params)
    Returns logits [batch, num_classes] (padding lanes sliced off) in out_dtype.
    """
    gen = _tpu_generation()
    M, K = x.shape
    K2, Cp = w_t.shape
    assert K == K2 and b2.shape == (1, Cp)

    x_bf = x.astype(jnp.bfloat16)

    x_isz = jnp.dtype(x_bf.dtype).itemsize
    w_isz = jnp.dtype(w_t.dtype).itemsize
    b_isz = jnp.dtype(b2.dtype).itemsize
    out_isz = jnp.dtype(out_dtype).itemsize

    vmem_cap, vmem_budget = _vmem_budget(gen)

    def fits(cand_tm):
        return _tile_vmem_bytes(cand_tm, K, Cp, x_isz, w_isz, out_isz, b_isz) <= vmem_budget

    if tm is None:
        tm = _pick_tm(M, gen, fits)
    assert M % tm == 0

    vmem_bytes = _tile_vmem_bytes(tm, K, Cp, x_isz, w_isz, out_isz, b_isz)
    assert vmem_bytes <= vmem_budget, (
        f"in_size too wide for single-K-block kernel on {gen} "
        f"({vmem_bytes} > {vmem_budget} bytes)"
    )
    vmem_limit = int(min(max(2 * vmem_bytes, 8 * 1024 * 1024), vmem_cap))

    grid = (M // tm,)

    out = pl.pallas_call(
        _linear_kernel,
        out_shape=jax.ShapeDtypeStruct((M, Cp), out_dtype),
        grid_spec=pltpu.PrefetchScalarGridSpec(
            num_scalar_prefetch=0,
            grid=grid,
            in_specs=[
                pl.BlockSpec((tm, K), lambda i: (i, 0)),   # x row tile, full K
                pl.BlockSpec((K, Cp), lambda i: (0, 0)),   # resident W^T block
                pl.BlockSpec((1, Cp), lambda i: (0, 0)),   # resident bias block
            ],
            out_specs=pl.BlockSpec((tm, Cp), lambda i: (i, 0)),  # lane-dense out
        ),
        compiler_params=pltpu.CompilerParams(
            dimension_semantics=("parallel",),
            vmem_limit_bytes=vmem_limit,
        ),
        cost_estimate=pl.CostEstimate(
            flops=2 * M * K * Cp,
            transcendentals=0,
            bytes_accessed=(
                M * K * x_isz
                + K * Cp * w_isz
                + Cp * b_isz
                + M * Cp * out_isz
            ),
        ),
    )(x_bf, w_t, b2)

    if num_classes is not None and num_classes != Cp:
        out = out[:, :num_classes]
    return out


# ---------------------------------------------------------------------------
# Demo / correctness check
# ---------------------------------------------------------------------------

if __name__ == "__main__":
    # Small LogReg-like shapes: forward implies x [batch, in_size].
    batch, in_size, num_classes = 32, 64, 10

    key = jax.random.PRNGKey(0)
    kx, kw, kb = jax.random.split(key, 3)

    x = jax.random.normal(kx, (batch, in_size), dtype=jnp.float32)
    # Deterministic nn.Linear-style init (uniform in +-1/sqrt(in_size)).
    bound = 1.0 / (in_size ** 0.5)
    weight = jax.random.uniform(
        kw, (num_classes, in_size), dtype=jnp.float32, minval=-bound, maxval=bound
    )
    bias = jax.random.uniform(
        kb, (num_classes,), dtype=jnp.float32, minval=-bound, maxval=bound
    )

    # One-time parameter prep (transpose + bf16 cast + lane padding).
    w_t, b2, n_cls = prepare_params(weight, bias)

    logits = logreg_forward(x, w_t, b2, num_classes=n_cls)
    logits = jax.block_until_ready(logits)

    # Correctness vs plain-JAX f32 reference of nn.Linear (bf16 inputs -> loose tol).
    ref = x @ weight.T + bias
    assert logits.shape == (batch, num_classes)
    max_err = float(jnp.max(jnp.abs(logits - ref)))
    assert max_err < 5e-2, f"max abs error {max_err}"

    # TODO(synk): criterion / predict / evaluate are training/eval utilities
    # (loss + argmax/threshold + sklearn metrics), not part of forward(); they
    # are intentionally not ported into the kernel.

    print("KERNEL_OK")
</pallas_src>

<mosaic_0001>
module attributes {stable_mosaic.version = 11 : i64} {
  func.func @_linear_kernel(%arg0: i32, %arg1: memref<32x64xbf16, #tpu.memory_space<vmem>>, %arg2: memref<64x128xbf16, #tpu.memory_space<vmem>>, %arg3: memref<1x128xf32, #tpu.memory_space<vmem>>, %arg4: memref<32x128xf32, #tpu.memory_space<vmem>>) attributes {dimension_semantics = [#tpu.dimension_semantics<parallel>], iteration_bounds = array<i64: 1>, scalar_prefetch = 0 : i64, scratch_operands = 0 : i64, tpu.core_type = #tpu.core_type<tc>, window_params = [{transform_indices = @transform_0, window_bounds = array<i64: 32, 64>}, {pipeline_mode = #tpu.pipeline_mode<synchronous>, transform_indices = @transform_1, window_bounds = array<i64: 64, 128>}, {pipeline_mode = #tpu.pipeline_mode<synchronous>, transform_indices = @transform_2, window_bounds = array<i64: 1, 128>}, {transform_indices = @transform_3, window_bounds = array<i64: 32, 128>}]} {
    %c0 = arith.constant 0 : index
    %c0_0 = arith.constant 0 : index
    %0 = vector.load %arg1[%c0, %c0_0] : memref<32x64xbf16, #tpu.memory_space<vmem>>, vector<32x64xbf16>
    %c0_1 = arith.constant 0 : index
    %c0_2 = arith.constant 0 : index
    %1 = vector.load %arg2[%c0_1, %c0_2] : memref<64x128xbf16, #tpu.memory_space<vmem>>, vector<64x128xbf16>
    %cst = arith.constant dense<0.000000e+00> : vector<32x128xf32>
    %2 = tpu.matmul %0, %1, %cst {dimension_numbers = #tpu.dot_dimension_numbers<[1], [0], [0], [1], [0, 0, 1, 1], [], []>} : vector<32x64xbf16>, vector<64x128xbf16>, vector<32x128xf32> -> vector<32x128xf32>
    %c0_3 = arith.constant 0 : index
    %c0_4 = arith.constant 0 : index
    %3 = vector.load %arg3[%c0_3, %c0_4] : memref<1x128xf32, #tpu.memory_space<vmem>>, vector<1x128xf32>
    %4 = vector.broadcast %3 : vector<1x128xf32> to vector<32x128xf32>
    %5 = arith.addf %2, %4 : vector<32x128xf32>
    %c0_5 = arith.constant 0 : index
    %c0_6 = arith.constant 0 : index
    %6 = vector.load %arg4[%c0_5, %c0_6] : memref<32x128xf32, #tpu.memory_space<vmem>>, vector<32x128xf32>
    tpu.vector_store %arg4[%c0_5, %c0_6], %5 {strides = array<i32>} : memref<32x128xf32, #tpu.memory_space<vmem>>, vector<32x128xf32>,
    return
  }
  func.func @transform_0(%arg0: i32) -> (i32, i32) {
    %c0_i32 = arith.constant 0 : i32
    %c0_i32_0 = arith.constant 0 : i32
    return %arg0, %c0_i32 : i32, i32
  }
  func.func @transform_1(%arg0: i32) -> (i32, i32) {
    %c0_i32 = arith.constant 0 : i32
    %c0_i32_0 = arith.constant 0 : i32
    %c0_i32_1 = arith.constant 0 : i32
    return %c0_i32, %c0_i32_0 : i32, i32
  }
  func.func @transform_2(%arg0: i32) -> (i32, i32) {
    %c0_i32 = arith.constant 0 : i32
    %c0_i32_0 = arith.constant 0 : i32
    %c0_i32_1 = arith.constant 0 : i32
    return %c0_i32, %c0_i32_0 : i32, i32
  }
  func.func @transform_3(%arg0: i32) -> (i32, i32) {
    %c0_i32 = arith.constant 0 : i32
    %c0_i32_0 = arith.constant 0 : i32
    return %arg0, %c0_i32 : i32, i32
  }
}

</mosaic_0001>

<bundles_post_ra>
// kernel: tpu_custom_call.1
= control target key start
LH: loop header
LB: loop body
LE: loop exit
PB: predicated region body
PF: predicated region fallthrough
CT: control target
= control target key end

     0   :  { %8 = vsyncpa [#allocation3], 0  ;;  %s353_s0 = inlined_call_operand.hbm [shape: bf16[32,64], index: 0, kind: input, shape index: {}]   ;;  %s354_s1 = inlined_call_operand.hbm [shape: bf16[64,128], index: 1, kind: input, shape index: {}]   ;;  %s355_s2 = inlined_call_operand.vmem [shape: f32[1,128], index: 2, kind: input, shape index: {}]   ;;  %s356_s3 = inlined_call_operand.hbm [shape: f32[32,128], index: 3, kind: output, shape index: {}]  }
   0x1   :  { %9 = vsyncpa [#allocation6], 0 }
   0x2   :  { %10 = vsyncpa [#allocation4], 0  ;;  %s287_s12 = smov [#allocation2]   ;;  %s215_s16 = scalar_lea.hbm %s353_s0, 256 }
   0x3   :  { %s16_s13 = sshll.u32 %s287_s12, 4  ;;  %p216_p0 = scmp.ne.s32.totalorder %s353_s0, %s215_s16  ;;  %s17_s13 = int_to_ptr.vmem [resolvable:$true] %s16_s13 }
   0x4   :  { %p219_p1 = scmp.lt.u32.totalorder %s215_s16, %s353_s0 }
   0x6   :  { %p221_p2 = pnand %p219_p1, %p216_p0 }
   0x8   :  { %224 = shalt.err (!%p221_p2)
}
   0x9   :  { %s225_s21 = scalar_lea.vmem %s17_s13, 256  ;;  %p230_p4 = scmp.lt.s32.totalorder %s17_s13, %s17_s13 }
   0xa   :  { %p226_p3 = scmp.ne.s32.totalorder %s17_s13, %s225_s21  ;;  %p231_p5 = scmp.lt.s32.totalorder %s225_s21, %s225_s21 }
   0xc   :  { %p232_p6 = por %p231_p5, %p230_p4 }
   0xe   :  { %p233_p7 = pnand %p232_p6, %p226_p3 }
  0x10   :  { %236 = shalt.err (!%p233_p7)
}
  0x11   :  { %s288_s22 = smov 64   ;;  %s289_s23 = smov 4  }
  0x12   :  { %22 = dma.hbm_to_vmem [thread:$0]  %s353_s0, 256, %s17_s13, [#allocation3], %s288_s22, %s288_s22, %s289_s23  }
  0x13   :  { %s290_s26 = smov [#allocation5]   ;;  %s237_s30 = scalar_lea.hbm %s354_s1, 512 }
  0x14   :  { %s28_s27 = sshll.u32 %s290_s26, 4  ;;  %p238_p8 = scmp.ne.s32.totalorder %s354_s1, %s237_s30  ;;  %s29_s27 = int_to_ptr.vmem [resolvable:$true] %s28_s27 }
  0x15   :  { %p241_p9 = scmp.lt.u32.totalorder %s237_s30, %s354_s1 }
  0x17   :  { %p243_p10 = pnand %p241_p9, %p238_p8 }
  0x19   :  { %246 = shalt.err (!%p243_p10)
}
  0x1a   :  { %s247_s8 = scalar_lea.vmem %s29_s27, 512  ;;  %p252_p12 = scmp.lt.s32.totalorder %s29_s27, %s29_s27 }
  0x1b   :  { %p248_p11 = scmp.ne.s32.totalorder %s29_s27, %s247_s8  ;;  %p253_p13 = scmp.lt.s32.totalorder %s247_s8, %s247_s8 }
  0x1d   :  { %p254_p0 = por %p253_p13, %p252_p12 }
  0x1f   :  { %p255_p1 = pnand %p254_p0, %p248_p11 }
  0x21   :  { %258 = shalt.err (!%p255_p1)
}
  0x22   :  { %34 = dma.hbm_to_vmem [thread:$0]  %s354_s1, 512, %s29_s27, [#allocation6], %s288_s22, %s288_s22, %s289_s23  }
  0x23   :  { %281 = dma.done.wait [#allocation3], 256  }
  0x24   :  { %282 = vsyncadd [#allocation3], 4294967040 }
  0x25   :  { %283 = dma.done.wait [#allocation6], 512  }
  0x26   :  { %284 = vsyncadd [#allocation6], 4294966784  ;;  %v209_v0 = vld [vmem:[#allocation5] sm:$0xff]   ;;  %v210_v1 = vld [vmem:[#allocation5 + $0x8] sm:$0xff]   ;;  %vm97_vm0 = vcmask 523264   ;;  %s291_s11 = smov [#allocation7]  }
  0x27   :  { %190 = vmatprep.subr.bf16.mxu0 %v209_v0  ;;  %v211_v2 = vld [vmem:[#allocation5 + $0x10] sm:$0xff]   ;;  %v212_v4 = vld [vmem:[#allocation5 + $0x18] sm:$0xff]   ;;  %s162_s12 = sshll.u32 %s291_s11, 4  ;;  %s163_s12 = int_to_ptr.vmem [resolvable:$true] %s162_s12 }
  0x28   :  { %191 = vmatpush3.bf16.msra.mxu0 %v209_v0  ;;  %v213_v3 = vld [vmem:[#allocation2] sm:$0xff]   ;;  %v214_v5 = vld [vmem:[#allocation2 + $0x8] sm:$0xff]   ;;  %s259_s13 = scalar_lea.vmem %s163_s12, 512  ;;  %p264_p3 = scmp.lt.s32.totalorder %s163_s12, %s163_s12 }
  0x29   :  { %192 = vmatprep.subr.bf16.mxu0 %v210_v1  ;;  %198 = vmatprep.mubr.msk.bf16.mxu0 %vm97_vm0, %v213_v3  ;;  %v175_v6 = vld [vmem:[%s355_s2] ss:$0 sm:$0xff]  ;;  %p260_p2 = scmp.ne.s32.totalorder %s163_s12, %s259_s13  ;;  %p265_p4 = scmp.lt.s32.totalorder %s259_s13, %s259_s13 }
  0x2b   :  { %p266_p5 = por %p265_p4, %p264_p3 }
  0x2c   :  { %193 = vmatpush3.bf16.msra.mxu0 %v210_v1 }
  0x2d   :  { %194 = vmatprep.subr.bf16.mxu0 %v211_v2  ;;  %p267_p6 = pnand %p266_p5, %p260_p2 }
  0x30   :  { %195 = vmatpush3.bf16.msra.mxu0 %v211_v2 }
  0x31   :  { %196 = vmatprep.subr.bf16.mxu0 %v212_v4 }
  0x34   :  { %197 = vmatpush3.bf16.msra.mxu0 %v212_v4 }
  0x37   :  { %199 = vmatmul.mubr.msk.bf16.vlgmr.msra.gmra.mrb[0].mxu0 %vm97_vm0, %v214_v5 }
 0x10a   :  { %v200_v7 = vpop.f32.mrb[0].mxu0 }
 0x10b   :  { %v147_v8 = vadd.f32 %v200_v7, %v175_v6  ;;  %v138_v9 = vpop.f32.mrb[1].mxu0 }
 0x10c   :  { %v139_v10 = vadd.f32 %v175_v6, %v138_v9  ;;  %v201_v11 = vpop.f32.mrb[2].mxu0 }
 0x10d   :  { %155 = vst [vmem:[#allocation7 + $0x10] sm:$0xff] %v147_v8  ;;  %v150_v12 = vadd.f32 %v201_v11, %v175_v6  ;;  %v141_v13 = vpop.f32.mrb[3].mxu0 }
 0x10e   :  { %153 = vst [vmem:[#allocation7] sm:$0xff] %v139_v10  ;;  %v142_v14 = vadd.f32 %v175_v6, %v141_v13 }
 0x10f   :  { %156 = vst [vmem:[#allocation7 + $0x18] sm:$0xff] %v150_v12 }
 0x110   :  { %154 = vst [vmem:[#allocation7 + $0x8] sm:$0xff] %v142_v14 }
 0x111   :  { %270 = shalt.err (!%p267_p6)
}
 0x112   :  { %s271_s15 = scalar_lea.hbm %s356_s3, 512 }
 0x113   :  { %p272_p7 = scmp.ne.s32.totalorder %s356_s3, %s271_s15  ;;  %p275_p8 = scmp.lt.u32.totalorder %s271_s15, %s356_s3 }
 0x115   :  { %p277_p9 = pnand %p275_p8, %p272_p7 }
 0x117   :  { %280 = shalt.err (!%p277_p9)
}
 0x118   :  { %s292_s20 = smov 128   ;;  %s293_s21 = smov 8  }
 0x119   :  { %168 = dma.vmem_to_hbm [thread:$0]  %s163_s12, 512, %s356_s3, [#allocation4], %s292_s20, %s292_s20, %s293_s21  }
 0x11a   :  { %285 = dma.done.wait [#allocation4], 512  }
 0x11b   :  { %286 = vsyncadd [#allocation4], 4294966784 }
 0x11c   :  { %172 = vsyncpa [#allocation3], 1 }
 0x11d   :  { %173 = vsyncpa [#allocation6], 1 }
 0x11e   :  { %174 = vsyncpa [#allocation4], 1 }

</bundles_post_ra>
